<compile_context>
chip_gen: v6e
topology: v6e:2x2x1
jax: 0.10.0
libtpu: 0.0.40
codegen_flags: <defaults>
</compile_context>

<pallas_src>
import functools
import math

import jax
import jax.numpy as jnp
from jax import lax
from jax.experimental import pallas as pl
from jax.experimental.pallas import tpu as pltpu

# ---------------- module config (small synthetic sizes) ----------------
EMBED_DIM = 32                       # embed_dim
MAMBA_LAYERS = 2                     # mamba_layers (=> 2 hidden GELU layers)
EXPANSION = 2.0                      # expansion_factor
VOCAB = 64                           # vocab_size
HIDDEN = int(EMBED_DIM * EXPANSION)  # 64
CONTEXT_DIM = EMBED_DIM              # context_dim == embed_dim in the module
B, S = 2, 8
LN_EPS = 1e-5
MAX_LEN = 64

LANE = 128
DIN = EMBED_DIM + CONTEXT_DIM                    # 64  (concat width; NOT padded)
HID_P = ((HIDDEN + LANE - 1) // LANE) * LANE     # 128
VOCAB_P = ((VOCAB + LANE - 1) // LANE) * LANE    # 128
GT_ROWS = 128                                    # combined gather-table rows (>= VOCAB+S+B)


def _elementwise_dtype():
    # bf16 bias-add / GELU on bf16-native VPU/EUP chips (v6e/v7x); f32 on v5e & older.
    try:
        kind = jax.devices()[0].device_kind.lower()
    except Exception:
        return jnp.float32
    return jnp.bfloat16 if ("v6" in kind or "v7" in kind) else jnp.float32


def _pick_tile_n(n_rows):
    # perf feedback: cap raised 256 -> 1024; >=2 grid steps when N>128 so both v7x
    # TensorCores get work (single step at latency-regime toy sizes).
    cap = 1024
    if n_rows <= 128:
        return max(8, -(-n_rows // 8) * 8)           # one step
    tile = min(cap, -(-n_rows // 16) * 8)            # ~ceil(N/2), rounded to 8 sublanes
    return max(8, tile)


# ---------------- Pallas kernel ----------------
def mdb_kernel(tok_ref, pos_ref, bat_ref, gt_ref, w1_ref, w2_ref, w3_ref, wh_ref,
               bias_ref, out_ref, *, ew_dtype):
    tn = out_ref.shape[0]

    # ---- fused embedding gather + positional add + context concat (one MXU matmul) ----
    # combined one-hot over the gather table rows: [0,64)=token, [64,64+S)=position,
    # [64+S,64+S+B)=batch(context).  Index columns are precomputed & disjoint per row.
    col = lax.broadcasted_iota(jnp.int32, (tn, GT_ROWS), 1)
    onehot = ((col == tok_ref[...]) | (col == pos_ref[...]) | (col == bat_ref[...]))
    onehot = onehot.astype(jnp.bfloat16)                              # [tn, 128]
    x = jnp.dot(onehot, gt_ref[...], preferred_element_type=jnp.float32)  # [tn, 64]
    x = x.astype(jnp.bfloat16)                                        # emb+pe | ctx

    bias = bias_ref[...]                                              # [4, 128] f32
    b1 = bias[0:1, :].astype(ew_dtype)
    b2 = bias[1:2, :].astype(ew_dtype)
    b3 = bias[2:3, :]                                                 # f32, pad lanes 0
    bh = bias[3:4, :]                                                 # f32 (LN beta folded)

    # sequence_processor: Linear(2E->H) GELU, Linear(H->H) GELU, Linear(H->E)
    # all lanes zero-padded to 128 (exact: GELU(0)=0, zero weight rows/cols, zero bias pad)
    h = jnp.dot(x, w1_ref[...], preferred_element_type=jnp.float32)
    h = jax.nn.gelu(h.astype(ew_dtype) + b1, approximate=True)        # EUP tanh
    h = jnp.dot(h.astype(jnp.bfloat16), w2_ref[...],
                preferred_element_type=jnp.float32)
    h = jax.nn.gelu(h.astype(ew_dtype) + b2, approximate=True)
    h = jnp.dot(h.astype(jnp.bfloat16), w3_ref[...],
                preferred_element_type=jnp.float32) + b3              # [tn, 128], lanes>=32 are 0

    # denoise_norm: LayerNorm over the E=32 real lanes (pad lanes are exactly zero,
    # so sums over 128 lanes equal sums over the real lanes; divide by E, not 128).
    mean = jnp.sum(h, axis=-1, keepdims=True) * (1.0 / EMBED_DIM)
    var = jnp.sum(h * h, axis=-1, keepdims=True) * (1.0 / EMBED_DIM) - mean * mean
    hn = (h - mean) * lax.rsqrt(var + LN_EPS)     # pad lanes nonzero; killed by zero wh rows

    # denoise_head with LayerNorm affine folded in: wh' = diag(g) @ wh, bh' = beta@wh + bh
    logits = jnp.dot(hn.astype(jnp.bfloat16), wh_ref[...],
                     preferred_element_type=jnp.float32) + bh
    out_ref[...] = logits.astype(out_ref.dtype)                       # 128-lane-dense store


def mdb_mlp_head(tok_idx, pos_idx, bat_idx, gather_tbl, weights, *, tile_n,
                 out_dtype=jnp.float32, ew_dtype=None):
    """index columns: [N_pad, 1] int32 each -> logits [N_pad, VOCAB_P] out_dtype."""
    w1, w2, w3, wh, bias = weights
    n_pad = tok_idx.shape[0]
    assert n_pad % tile_n == 0
    grid = (n_pad // tile_n,)
    if ew_dtype is None:
        ew_dtype = _elementwise_dtype()

    const = lambda shape: pl.BlockSpec(shape, lambda i: (0, 0))
    row_idx = lambda: pl.BlockSpec((tile_n, 1), lambda i: (i, 0))

    # TODO(synk): at production vocab, add a vocab grid axis (tile wh/output along it),
    # set vmem_limit_bytes explicitly, and size tiles against v7x's 64 MiB VMEM.
    return pl.pallas_call(
        functools.partial(mdb_kernel, ew_dtype=ew_dtype),
        out_shape=jax.ShapeDtypeStruct((n_pad, VOCAB_P), out_dtype),
        grid_spec=pltpu.PrefetchScalarGridSpec(
            num_scalar_prefetch=0,
            grid=grid,
            in_specs=[
                row_idx(),                      # token index column
                row_idx(),                      # position index column (offset by VOCAB)
                row_idx(),                      # batch/context index column
                const((GT_ROWS, DIN)),          # combined gather table (emb|pe|ctx)
                const((DIN, HID_P)),            # linear 1 weight
                const((HID_P, HID_P)),          # linear 2 weight
                const((HID_P, LANE)),           # linear 3 weight (cols padded to 128)
                const((LANE, VOCAB_P)),         # denoise head (LN folded, rows padded)
                const((4, LANE)),               # packed bias slab
            ],
            out_specs=pl.BlockSpec((tile_n, VOCAB_P), lambda i: (i, 0)),
        ),
        compiler_params=pltpu.CompilerParams(dimension_semantics=("parallel",)),
    )(tok_idx, pos_idx, bat_idx, gather_tbl, w1, w2, w3, wh, bias)


# ---------------- parameter init (deterministic, matches _init_weights) ----------------
def xavier_uniform(key, fan_in, fan_out):
    limit = math.sqrt(6.0 / (fan_in + fan_out))
    # stored [in, out] (transpose of torch's [out, in]) so the kernel does x @ W
    return jax.random.uniform(key, (fan_in, fan_out), jnp.float32, -limit, limit)


def make_positional_encoding(d_model, max_len):
    position = jnp.arange(max_len, dtype=jnp.float32)[:, None]
    div_term = jnp.exp(jnp.arange(0, d_model, 2, dtype=jnp.float32)
                       * (-math.log(10000.0) / d_model))
    pe = jnp.zeros((max_len, d_model), jnp.float32)
    pe = pe.at[:, 0::2].set(jnp.sin(position * div_term))
    pe = pe.at[:, 1::2].set(jnp.cos(position * div_term))
    return pe


def init_params(key):
    ks = jax.random.split(key, 6)
    # embedding: normal(0, embed_dim**-0.5).  NOTE: _init_weights overwrites the
    # padding_idx row too, so row 0 is NOT zero (matches the torch code).
    emb = jax.random.normal(ks[0], (VOCAB, EMBED_DIM), jnp.float32) * (EMBED_DIM ** -0.5)

    w1 = xavier_uniform(ks[1], EMBED_DIM + CONTEXT_DIM, HIDDEN)
    b1 = jnp.zeros((1, HIDDEN), jnp.float32)
    w2 = xavier_uniform(ks[2], HIDDEN, HIDDEN)
    b2 = jnp.zeros((1, HIDDEN), jnp.float32)
    w3 = xavier_uniform(ks[3], HIDDEN, EMBED_DIM)
    b3 = jnp.zeros((1, EMBED_DIM), jnp.float32)

    ln_g = jnp.ones((1, EMBED_DIM), jnp.float32)    # LayerNorm weight (1-D, not xavier'd)
    ln_b = jnp.zeros((1, EMBED_DIM), jnp.float32)

    wh = xavier_uniform(ks[4], EMBED_DIM, VOCAB)
    bh = jnp.zeros((1, VOCAB), jnp.float32)

    pe = make_positional_encoding(EMBED_DIM, MAX_LEN)
    mlp_params = (w1, b1, w2, b2, w3, b3, ln_g, ln_b, wh, bh)
    return emb, pe, mlp_params


def prepare_weights(mlp_params):
    """One-time prep: fold LN affine into the head, zero-pad to 128 lanes, cast to bf16."""
    (w1, b1, w2, b2, w3, b3, g, beta, wh, bh) = mlp_params

    # fold LayerNorm gamma/beta into the denoise head (exact algebra)
    wh_f = g.reshape(EMBED_DIM, 1) * wh                 # diag(g) @ wh   [E, V]
    bh_f = beta @ wh + bh                               # [1, V]

    # zero-pad every matmul output / contraction dim to 128 lanes (exact: GELU(0)=0,
    # zero bias padding, zero weight rows/cols).  K dims are NOT padded past need.
    w1_p = jnp.pad(w1, ((0, 0), (0, HID_P - HIDDEN)))                      # [64, 128]
    w2_p = jnp.pad(w2, ((0, HID_P - HIDDEN), (0, HID_P - HIDDEN)))         # [128, 128]
    w3_p = jnp.pad(w3, ((0, HID_P - HIDDEN), (0, LANE - EMBED_DIM)))       # [128, 128]
    wh_p = jnp.pad(wh_f, ((0, LANE - EMBED_DIM), (0, VOCAB_P - VOCAB)))    # [128, 128]

    # pack all bias vectors into one (4, 128) slab (single operand / DMA descriptor)
    bias = jnp.zeros((4, LANE), jnp.float32)
    bias = bias.at[0, :HIDDEN].set(b1[0])
    bias = bias.at[1, :HIDDEN].set(b2[0])
    bias = bias.at[2, :EMBED_DIM].set(b3[0])
    bias = bias.at[3, :VOCAB].set(bh_f[0])

    bf16 = lambda a: a.astype(jnp.bfloat16)
    return (bf16(w1_p), bf16(w2_p), bf16(w3_p), bf16(wh_p), bias)


def _build_gather_table(emb, pe, ctx, seq_len):
    """Pack emb / pe / ctx into one [128, 64] bf16 table for the in-kernel gather."""
    b = ctx.shape[0]
    # TODO(synk): for batch sizes where VOCAB + seq_len + B > 128, gather the context
    # rows with a separate per-tile BlockSpec instead of the combined table.
    assert VOCAB + seq_len + b <= GT_ROWS, "combined gather table overflow"
    gt = jnp.zeros((GT_ROWS, DIN), jnp.float32)
    gt = gt.at[:VOCAB, :EMBED_DIM].set(emb)                              # token rows
    gt = gt.at[VOCAB:VOCAB + seq_len, :EMBED_DIM].set(pe[:seq_len])      # position rows
    gt = gt.at[VOCAB + seq_len:VOCAB + seq_len + b, EMBED_DIM:].set(ctx) # context rows
    return gt.astype(jnp.bfloat16)


# ---------------- full MDBBlock forward (MLP fallback, eval mode) ----------------
def mdb_block_forward(x_t, x_prev_context, emb, pe, head_weights, out_dtype=jnp.float32):
    b, s = x_t.shape
    n = b * s
    # x_prev_context handled for the 2-D [B, E] case (broadcast along seq), as in the demo.
    gt = _build_gather_table(emb, pe, x_prev_context, s)

    rows = jnp.arange(n, dtype=jnp.int32)
    tok_idx = x_t.reshape(n, 1).astype(jnp.int32)
    pos_idx = (VOCAB + rows % s).reshape(n, 1).astype(jnp.int32)
    bat_idx = (VOCAB + s + rows // s).reshape(n, 1).astype(jnp.int32)

    tile_n = _pick_tile_n(n)
    n_pad = -(-n // tile_n) * tile_n
    if n_pad != n:     # pad rows select emb[0] and are discarded below (no divisibility assert)
        pad = ((0, n_pad - n), (0, 0))
        tok_idx = jnp.pad(tok_idx, pad)
        pos_idx = jnp.pad(pos_idx, pad)
        bat_idx = jnp.pad(bat_idx, pad)

    logits_p = mdb_mlp_head(tok_idx, pos_idx, bat_idx, gt, head_weights,
                            tile_n=tile_n, out_dtype=out_dtype)
    # TODO(synk): at scale, consume the 128-lane padded slab (bf16 out_dtype) downstream
    # instead of this slice+reshape pass, to cut the dominant output HBM traffic.
    logits = logits_p[:n, :VOCAB].reshape(b, s, VOCAB)
    return logits, None  # new_mamba_state is None on the MLP fallback path


# ---------------- pure-JAX f32 reference (tanh GELU to match the kernel's EUP GELU) ----------------
def mdb_block_reference(x_t, x_prev_context, emb, pe, mlp_params):
    (w1, b1, w2, b2, w3, b3, g, beta, wh, bh) = mlp_params
    b, s = x_t.shape
    x_emb = jnp.take(emb, x_t, axis=0) + pe[None, :s, :]
    ctx = jnp.broadcast_to(x_prev_context[:, None, :], (b, s, CONTEXT_DIM))
    x = jnp.concatenate([x_emb, ctx], axis=-1).reshape(b * s, DIN)
    gelu = lambda v: jax.nn.gelu(v, approximate=True)   # torch uses exact erf (~1e-3 away)
    h = gelu(x @ w1 + b1)
    h = gelu(h @ w2 + b2)
    h = h @ w3 + b3
    mean = h.mean(-1, keepdims=True)
    var = jnp.square(h - mean).mean(-1, keepdims=True)
    hn = (h - mean) * lax.rsqrt(var + LN_EPS) * g + beta
    return (hn @ wh + bh).reshape(b, s, VOCAB)


if __name__ == "__main__":
    key = jax.random.PRNGKey(0)
    k_param, k_tok, k_ctx = jax.random.split(key, 3)

    emb, pe, mlp_params = init_params(k_param)
    head_weights = prepare_weights(mlp_params)

    x_t = jax.random.randint(k_tok, (B, S), 0, VOCAB, dtype=jnp.int32)
    x_prev_context = jax.random.normal(k_ctx, (B, CONTEXT_DIM), jnp.float32)

    logits, new_state = mdb_block_forward(x_t, x_prev_context, emb, pe, head_weights)
    logits = jax.block_until_ready(logits)

    assert logits.shape == (B, S, VOCAB)
    assert new_state is None

    # residual error is dominated by bf16 MXU inputs (amplified ~3x through LayerNorm);
    # reference uses the same tanh GELU, so 5e-2 gives ~3x margin over the expected ~1.5e-2.
    ref = mdb_block_reference(x_t, x_prev_context, emb, pe, mlp_params)
    max_err = float(jnp.max(jnp.abs(logits.astype(jnp.float32) - ref)))
    assert max_err < 5e-2, f"max abs error {max_err}"

    print("KERNEL_OK")
</pallas_src>

<mosaic_0001>
module attributes {stable_mosaic.version = 11 : i64} {
  func.func @mdb_kernel(%arg0: i32, %arg1: memref<16x1xi32, #tpu.memory_space<vmem>>, %arg2: memref<16x1xi32, #tpu.memory_space<vmem>>, %arg3: memref<16x1xi32, #tpu.memory_space<vmem>>, %arg4: memref<128x64xbf16, #tpu.memory_space<vmem>>, %arg5: memref<64x128xbf16, #tpu.memory_space<vmem>>, %arg6: memref<128x128xbf16, #tpu.memory_space<vmem>>, %arg7: memref<128x128xbf16, #tpu.memory_space<vmem>>, %arg8: memref<128x128xbf16, #tpu.memory_space<vmem>>, %arg9: memref<4x128xf32, #tpu.memory_space<vmem>>, %arg10: memref<16x128xf32, #tpu.memory_space<vmem>>) attributes {dimension_semantics = [#tpu.dimension_semantics<parallel>], iteration_bounds = array<i64: 1>, scalar_prefetch = 0 : i64, scratch_operands = 0 : i64, tpu.core_type = #tpu.core_type<tc>, window_params = [{transform_indices = @transform_0, window_bounds = array<i64: 16, 1>}, {transform_indices = @transform_1, window_bounds = array<i64: 16, 1>}, {transform_indices = @transform_2, window_bounds = array<i64: 16, 1>}, {pipeline_mode = #tpu.pipeline_mode<synchronous>, transform_indices = @transform_3, window_bounds = array<i64: 128, 64>}, {pipeline_mode = #tpu.pipeline_mode<synchronous>, transform_indices = @transform_4, window_bounds = array<i64: 64, 128>}, {pipeline_mode = #tpu.pipeline_mode<synchronous>, transform_indices = @transform_5, window_bounds = array<i64: 128, 128>}, {pipeline_mode = #tpu.pipeline_mode<synchronous>, transform_indices = @transform_6, window_bounds = array<i64: 128, 128>}, {pipeline_mode = #tpu.pipeline_mode<synchronous>, transform_indices = @transform_7, window_bounds = array<i64: 128, 128>}, {pipeline_mode = #tpu.pipeline_mode<synchronous>, transform_indices = @transform_8, window_bounds = array<i64: 4, 128>}, {transform_indices = @transform_9, window_bounds = array<i64: 16, 128>}]} {
    %0 = tpu.iota {dimensions = array<i32: 1>} : vector<16x128xi32>
    %c0 = arith.constant 0 : index
    %c0_0 = arith.constant 0 : index
    %1 = vector.load %arg1[%c0, %c0_0] : memref<16x1xi32, #tpu.memory_space<vmem>>, vector<16x1xi32>
    %2 = vector.broadcast %1 : vector<16x1xi32> to vector<16x128xi32>
    %3 = arith.cmpi eq, %0, %2 : vector<16x128xi32>
    %c0_1 = arith.constant 0 : index
    %c0_2 = arith.constant 0 : index
    %4 = vector.load %arg2[%c0_1, %c0_2] : memref<16x1xi32, #tpu.memory_space<vmem>>, vector<16x1xi32>
    %5 = vector.broadcast %4 : vector<16x1xi32> to vector<16x128xi32>
    %6 = arith.cmpi eq, %0, %5 : vector<16x128xi32>
    %7 = arith.ori %3, %6 : vector<16x128xi1>
    %c0_3 = arith.constant 0 : index
    %c0_4 = arith.constant 0 : index
    %8 = vector.load %arg3[%c0_3, %c0_4] : memref<16x1xi32, #tpu.memory_space<vmem>>, vector<16x1xi32>
    %9 = vector.broadcast %8 : vector<16x1xi32> to vector<16x128xi32>
    %10 = arith.cmpi eq, %0, %9 : vector<16x128xi32>
    %11 = arith.ori %7, %10 : vector<16x128xi1>
    %12 = arith.extui %11 : vector<16x128xi1> to vector<16x128xi32>
    %13 = arith.sitofp %12 : vector<16x128xi32> to vector<16x128xf32>
    %14 = arith.truncf %13 : vector<16x128xf32> to vector<16x128xbf16>
    %c0_5 = arith.constant 0 : index
    %c0_6 = arith.constant 0 : index
    %15 = vector.load %arg4[%c0_5, %c0_6] : memref<128x64xbf16, #tpu.memory_space<vmem>>, vector<128x64xbf16>
    %cst = arith.constant dense<0.000000e+00> : vector<16x64xf32>
    %16 = tpu.matmul %14, %15, %cst {dimension_numbers = #tpu.dot_dimension_numbers<[1], [0], [0], [1], [0, 0, 1, 1], [], []>} : vector<16x128xbf16>, vector<128x64xbf16>, vector<16x64xf32> -> vector<16x64xf32>
    %17 = arith.truncf %16 : vector<16x64xf32> to vector<16x64xbf16>
    %c0_7 = arith.constant 0 : index
    %c0_8 = arith.constant 0 : index
    %18 = vector.load %arg9[%c0_7, %c0_8] : memref<4x128xf32, #tpu.memory_space<vmem>>, vector<4x128xf32>
    %19 = vector.extract_strided_slice %18 {offsets = [0, 0], sizes = [1, 128], strides = [1, 1]} : vector<4x128xf32> to vector<1x128xf32>
    %20 = vector.extract_strided_slice %18 {offsets = [1, 0], sizes = [1, 128], strides = [1, 1]} : vector<4x128xf32> to vector<1x128xf32>
    %21 = vector.extract_strided_slice %18 {offsets = [2, 0], sizes = [1, 128], strides = [1, 1]} : vector<4x128xf32> to vector<1x128xf32>
    %22 = vector.extract_strided_slice %18 {offsets = [3, 0], sizes = [1, 128], strides = [1, 1]} : vector<4x128xf32> to vector<1x128xf32>
    %c0_9 = arith.constant 0 : index
    %c0_10 = arith.constant 0 : index
    %23 = vector.load %arg5[%c0_9, %c0_10] : memref<64x128xbf16, #tpu.memory_space<vmem>>, vector<64x128xbf16>
    %cst_11 = arith.constant dense<0.000000e+00> : vector<16x128xf32>
    %24 = tpu.matmul %17, %23, %cst_11 {dimension_numbers = #tpu.dot_dimension_numbers<[1], [0], [0], [1], [0, 0, 1, 1], [], []>} : vector<16x64xbf16>, vector<64x128xbf16>, vector<16x128xf32> -> vector<16x128xf32>
    %25 = vector.broadcast %19 : vector<1x128xf32> to vector<16x128xf32>
    %26 = arith.addf %24, %25 : vector<16x128xf32>
    %27 = arith.mulf %26, %26 : vector<16x128xf32>
    %28 = arith.mulf %26, %27 : vector<16x128xf32>
    %cst_12 = arith.constant 4.471500e-02 : f32
    %29 = vector.broadcast %cst_12 : f32 to vector<16x128xf32>
    %30 = arith.mulf %29, %28 : vector<16x128xf32>
    %31 = arith.addf %26, %30 : vector<16x128xf32>
    %cst_13 = arith.constant 0.797884583 : f32
    %32 = vector.broadcast %cst_13 : f32 to vector<16x128xf32>
    %33 = arith.mulf %32, %31 : vector<16x128xf32>
    %34 = math.tanh %33 : vector<16x128xf32>
    %cst_14 = arith.constant 1.000000e+00 : f32
    %35 = vector.broadcast %cst_14 : f32 to vector<16x128xf32>
    %36 = arith.addf %35, %34 : vector<16x128xf32>
    %cst_15 = arith.constant 5.000000e-01 : f32
    %37 = vector.broadcast %cst_15 : f32 to vector<16x128xf32>
    %38 = arith.mulf %37, %36 : vector<16x128xf32>
    %39 = arith.mulf %26, %38 : vector<16x128xf32>
    %40 = arith.truncf %39 : vector<16x128xf32> to vector<16x128xbf16>
    %c0_16 = arith.constant 0 : index
    %c0_17 = arith.constant 0 : index
    %41 = vector.load %arg6[%c0_16, %c0_17] : memref<128x128xbf16, #tpu.memory_space<vmem>>, vector<128x128xbf16>
    %cst_18 = arith.constant dense<0.000000e+00> : vector<16x128xf32>
    %42 = tpu.matmul %40, %41, %cst_18 {dimension_numbers = #tpu.dot_dimension_numbers<[1], [0], [0], [1], [0, 0, 1, 1], [], []>} : vector<16x128xbf16>, vector<128x128xbf16>, vector<16x128xf32> -> vector<16x128xf32>
    %43 = vector.broadcast %20 : vector<1x128xf32> to vector<16x128xf32>
    %44 = arith.addf %42, %43 : vector<16x128xf32>
    %45 = arith.mulf %44, %44 : vector<16x128xf32>
    %46 = arith.mulf %44, %45 : vector<16x128xf32>
    %cst_19 = arith.constant 4.471500e-02 : f32
    %47 = vector.broadcast %cst_19 : f32 to vector<16x128xf32>
    %48 = arith.mulf %47, %46 : vector<16x128xf32>
    %49 = arith.addf %44, %48 : vector<16x128xf32>
    %cst_20 = arith.constant 0.797884583 : f32
    %50 = vector.broadcast %cst_20 : f32 to vector<16x128xf32>
    %51 = arith.mulf %50, %49 : vector<16x128xf32>
    %52 = math.tanh %51 : vector<16x128xf32>
    %cst_21 = arith.constant 1.000000e+00 : f32
    %53 = vector.broadcast %cst_21 : f32 to vector<16x128xf32>
    %54 = arith.addf %53, %52 : vector<16x128xf32>
    %cst_22 = arith.constant 5.000000e-01 : f32
    %55 = vector.broadcast %cst_22 : f32 to vector<16x128xf32>
    %56 = arith.mulf %55, %54 : vector<16x128xf32>
    %57 = arith.mulf %44, %56 : vector<16x128xf32>
    %58 = arith.truncf %57 : vector<16x128xf32> to vector<16x128xbf16>
    %c0_23 = arith.constant 0 : index
    %c0_24 = arith.constant 0 : index
    %59 = vector.load %arg7[%c0_23, %c0_24] : memref<128x128xbf16, #tpu.memory_space<vmem>>, vector<128x128xbf16>
    %cst_25 = arith.constant dense<0.000000e+00> : vector<16x128xf32>
    %60 = tpu.matmul %58, %59, %cst_25 {dimension_numbers = #tpu.dot_dimension_numbers<[1], [0], [0], [1], [0, 0, 1, 1], [], []>} : vector<16x128xbf16>, vector<128x128xbf16>, vector<16x128xf32> -> vector<16x128xf32>
    %61 = vector.broadcast %21 : vector<1x128xf32> to vector<16x128xf32>
    %62 = arith.addf %60, %61 : vector<16x128xf32>
    %cst_26 = arith.constant dense<0.000000e+00> : vector<16xf32>
    %63 = vector.multi_reduction <add>, %62, %cst_26 [1] : vector<16x128xf32> to vector<16xf32>
    %64 = vector.shape_cast %63 : vector<16xf32> to vector<16x1xf32>
    %cst_27 = arith.constant 3.125000e-02 : f32
    %65 = vector.broadcast %cst_27 : f32 to vector<16x1xf32>
    %66 = arith.mulf %64, %65 : vector<16x1xf32>
    %67 = arith.mulf %62, %62 : vector<16x128xf32>
    %cst_28 = arith.constant dense<0.000000e+00> : vector<16xf32>
    %68 = vector.multi_reduction <add>, %67, %cst_28 [1] : vector<16x128xf32> to vector<16xf32>
    %69 = vector.shape_cast %68 : vector<16xf32> to vector<16x1xf32>
    %cst_29 = arith.constant 3.125000e-02 : f32
    %70 = vector.broadcast %cst_29 : f32 to vector<16x1xf32>
    %71 = arith.mulf %69, %70 : vector<16x1xf32>
    %72 = arith.mulf %66, %66 : vector<16x1xf32>
    %73 = arith.subf %71, %72 : vector<16x1xf32>
    %74 = vector.broadcast %66 : vector<16x1xf32> to vector<16x128xf32>
    %75 = arith.subf %62, %74 : vector<16x128xf32>
    %cst_30 = arith.constant 9.99999974E-6 : f32
    %76 = vector.broadcast %cst_30 : f32 to vector<16x1xf32>
    %77 = arith.addf %73, %76 : vector<16x1xf32>
    %78 = math.rsqrt %77 : vector<16x1xf32>
    %79 = vector.broadcast %78 : vector<16x1xf32> to vector<16x128xf32>
    %80 = arith.mulf %75, %79 : vector<16x128xf32>
    %81 = arith.truncf %80 : vector<16x128xf32> to vector<16x128xbf16>
    %c0_31 = arith.constant 0 : index
    %c0_32 = arith.constant 0 : index
    %82 = vector.load %arg8[%c0_31, %c0_32] : memref<128x128xbf16, #tpu.memory_space<vmem>>, vector<128x128xbf16>
    %cst_33 = arith.constant dense<0.000000e+00> : vector<16x128xf32>
    %83 = tpu.matmul %81, %82, %cst_33 {dimension_numbers = #tpu.dot_dimension_numbers<[1], [0], [0], [1], [0, 0, 1, 1], [], []>} : vector<16x128xbf16>, vector<128x128xbf16>, vector<16x128xf32> -> vector<16x128xf32>
    %84 = vector.broadcast %22 : vector<1x128xf32> to vector<16x128xf32>
    %85 = arith.addf %83, %84 : vector<16x128xf32>
    %c0_34 = arith.constant 0 : index
    %c0_35 = arith.constant 0 : index
    %86 = vector.load %arg10[%c0_34, %c0_35] : memref<16x128xf32, #tpu.memory_space<vmem>>, vector<16x128xf32>
    tpu.vector_store %arg10[%c0_34, %c0_35], %85 {strides = array<i32>} : memref<16x128xf32, #tpu.memory_space<vmem>>, vector<16x128xf32>,
    return
  }
  func.func @transform_0(%arg0: i32) -> (i32, i32) {
    %c0_i32 = arith.constant 0 : i32
    %c0_i32_0 = arith.constant 0 : i32
    return %arg0, %c0_i32 : i32, i32
  }
  func.func @transform_1(%arg0: i32) -> (i32, i32) {
    %c0_i32 = arith.constant 0 : i32
    %c0_i32_0 = arith.constant 0 : i32
    return %arg0, %c0_i32 : i32, i32
  }
  func.func @transform_2(%arg0: i32) -> (i32, i32) {
    %c0_i32 = arith.constant 0 : i32
    %c0_i32_0 = arith.constant 0 : i32
    return %arg0, %c0_i32 : i32, i32
  }
  func.func @transform_3(%arg0: i32) -> (i32, i32) {
    %c0_i32 = arith.constant 0 : i32
    %c0_i32_0 = arith.constant 0 : i32
    %c0_i32_1 = arith.constant 0 : i32
    return %c0_i32, %c0_i32_0 : i32, i32
  }
  func.func @transform_4(%arg0: i32) -> (i32, i32) {
    %c0_i32 = arith.constant 0 : i32
    %c0_i32_0 = arith.constant 0 : i32
    %c0_i32_1 = arith.constant 0 : i32
    return %c0_i32, %c0_i32_0 : i32, i32
  }
  func.func @transform_5(%arg0: i32) -> (i32, i32) {
    %c0_i32 = arith.constant 0 : i32
    %c0_i32_0 = arith.constant 0 : i32
    %c0_i32_1 = arith.constant 0 : i32
    return %c0_i32, %c0_i32_0 : i32, i32
  }
  func.func @transform_6(%arg0: i32) -> (i32, i32) {
    %c0_i32 = arith.constant 0 : i32
    %c0_i32_0 = arith.constant 0 : i32
    %c0_i32_1 = arith.constant 0 : i32
    return %c0_i32, %c0_i32_0 : i32, i32
  }
  func.func @transform_7(%arg0: i32) -> (i32, i32) {
    %c0_i32 = arith.constant 0 : i32
    %c0_i32_0 = arith.constant 0 : i32
    %c0_i32_1 = arith.constant 0 : i32
    return %c0_i32, %c0_i32_0 : i32, i32
  }
  func.func @transform_8(%arg0: i32) -> (i32, i32) {
    %c0_i32 = arith.constant 0 : i32
    %c0_i32_0 = arith.constant 0 : i32
    %c0_i32_1 = arith.constant 0 : i32
    return %c0_i32, %c0_i32_0 : i32, i32
  }
  func.func @transform_9(%arg0: i32) -> (i32, i32) {
    %c0_i32 = arith.constant 0 : i32
    %c0_i32_0 = arith.constant 0 : i32
    return %arg0, %c0_i32 : i32, i32
  }
}

</mosaic_0001>

<bundles_post_ra>
// kernel: tpu_custom_call.1
= control target key start
LH: loop header
LB: loop body
LE: loop exit
PB: predicated region body
PF: predicated region fallthrough
CT: control target
= control target key end

     0   :  { %14 = vsyncpa [#allocation3], 0  ;;  %s1225_s0 = inlined_call_operand.vmem [shape: s32[16,1], index: 0, kind: input, shape index: {}]   ;;  %s1226_s1 = inlined_call_operand.vmem [shape: s32[16,1], index: 1, kind: input, shape index: {}]   ;;  %s1227_s2 = inlined_call_operand.vmem [shape: s32[16,1], index: 2, kind: input, shape index: {}]   ;;  %s1228_s3 = inlined_call_operand.vmem [shape: bf16[128,64], index: 3, kind: input, shape index: {}]   ;;  %s1229_s4 = inlined_call_operand.hbm [shape: bf16[64,128], index: 4, kind: input, shape index: {}]   ;;  %s1230_s5 = inlined_call_operand.vmem [shape: bf16[128,128], index: 5, kind: input, shape index: {}]   ;;  %s1231_s6 = inlined_call_operand.vmem [shape: bf16[128,128], index: 6, kind: input, shape index: {}]   ;;  %s1232_s7 = inlined_call_operand.hbm [shape: bf16[128,128], index: 7, kind: input, shape index: {}]   ;;  %s1233_s8 = inlined_call_operand.vmem [shape: f32[4,128], index: 8, kind: input, shape index: {}]   ;;  %s1234_s9 = inlined_call_operand.hbm [shape: f32[16,128], index: 9, kind: output, shape index: {}]  }
   0x1   :  { %15 = vsyncpa [#allocation6], 0 }
   0x2   :  { %16 = vsyncpa [#allocation4], 0  ;;  %s1004_s30 = smov [#allocation2]  }
   0x3   :  { %s30_s10 = sshll.u32 %s1004_s30, 4  ;;  %s31_s10 = int_to_ptr.vmem [resolvable:$true] %s30_s10 }
   0x4   :  { %s946_s11 = scalar_lea.vmem %s31_s10, 512  ;;  %p951_p1 = scmp.lt.s32.totalorder %s31_s10, %s31_s10 }
   0x5   :  { %p947_p0 = scmp.ne.s32.totalorder %s31_s10, %s946_s11  ;;  %p952_p2 = scmp.lt.s32.totalorder %s946_s11, %s946_s11 }
   0x7   :  { %p953_p3 = por %p952_p2, %p951_p1 }
   0x9   :  { %p954_p4 = pnand %p953_p3, %p947_p0 }
   0xb   :  { %957 = shalt.err (!%p954_p4)
}
   0xc   :  { %s1005_s12 = smov 64   ;;  %s1006_s13 = smov 4  }
   0xd   :  { %36 = dma.hbm_to_vmem [thread:$0]  %s1229_s4, 512, %s31_s10, [#allocation3], %s1005_s12, %s1005_s12, %s1006_s13  }
   0xe   :  { %s1007_s16 = smov [#allocation5]  }
   0xf   :  { %s46_s17 = sshll.u32 %s1007_s16, 4  ;;  %s47_s17 = int_to_ptr.vmem [resolvable:$true] %s46_s17 }
  0x10   :  { %s966_s18 = scalar_lea.vmem %s47_s17, 1024  ;;  %p971_p6 = scmp.lt.s32.totalorder %s47_s17, %s47_s17 }
  0x11   :  { %p967_p5 = scmp.ne.s32.totalorder %s47_s17, %s966_s18  ;;  %p972_p7 = scmp.lt.s32.totalorder %s966_s18, %s966_s18 }
  0x13   :  { %p973_p8 = por %p972_p7, %p971_p6 }
  0x15   :  { %p974_p9 = pnand %p973_p8, %p967_p5 }
  0x17   :  { %977 = shalt.err (!%p974_p9)
}
  0x18   :  { %52 = dma.hbm_to_vmem [thread:$0]  %s1232_s7, 1024, %s47_s17, [#allocation6], %s1005_s12, %s1005_s12, %s1006_s13  }
  0x19   :  { %998 = dma.done.wait [#allocation3], 512  }
  0x1a   :  { %999 = vsyncadd [#allocation3], 4294966784 }
  0x1b   :  { %1000 = dma.done.wait [#allocation6], 1024  }
  0x1c   :  { %1001 = vsyncadd [#allocation6], 4294966272  ;;  %v1008_v0 = vmov 0   ;;  %v1009_v1 = vmov 0.0   ;;  %v74_v2 = vld [vmem:[%s1226_s1] sm:$0xff]  ;;  %v75_v4 = vld [vmem:[%s1226_s1 + $0x8] sm:$0xff]  ;;  %v62_v18 = vlaneseq }
  0x1d   :  { %889 = vset.pattern.permute.xlu1 %v1008_v0  ;;  %888 = vset.pattern.permute.xlu0 %v1008_v0  ;;  %v64_v3 = vld [vmem:[%s1225_s0] sm:$0xff]  ;;  %v65_v5 = vld [vmem:[%s1225_s0 + $0x8] sm:$0xff]  ;;  %v890_v6 = vld [vmem:[%s1228_s3 + $0x38] sm:$0xff]   ;;  %vm1010_vm0 = vmmov 0   ;;  %v1011_v26 = vmov 1.0|1.0  }
  0x1e   :  { %785 = vmatprep.subr.bf16.mxu0 %v1009_v1  ;;  %805 = vmatprep.subr.bf16.mxu1 %v1009_v1  ;;  %v891_v7 = vld [vmem:[%s1228_s3 + $0x30] sm:$0xff]   ;;  %v87_v8 = vld [vmem:[%s1227_s2 + $0x8] sm:$0xff]  ;;  %v86_v9 = vld [vmem:[%s1227_s2] sm:$0xff]  ;;  %v63_v21 = vand.u32 127, %v62_v18  ;;  %vm246_vm12 = vcmask 523264   ;;  %v1167_v42 = vshrl.u32 %v62_v18, 7 }
  0x1f   :  { %77 = vperm.xlu1 %889, %v74_v2   ;;  %67 = vperm.xlu0 %888, %v64_v3   ;;  %v892_v10 = vld [vmem:[%s1228_s3 + $0x28] sm:$0xff]   ;;  %v893_v11 = vld [vmem:[%s1228_s3 + $0x20] sm:$0xff]   ;;  %v898_v12 = vld [vmem:[#allocation2 + $0x18] sm:$0xff]  }
  0x20   :  { %786 = vmatpush3.bf16.msra.mxu0 %v890_v6  ;;  %801 = vmatprep.mubr.msk.bf16.mxu0 %vm1010_vm0, %v1009_v1  ;;  %v899_v13 = vld [vmem:[#allocation2 + $0x10] sm:$0xff]   ;;  %v894_v14 = vld [vmem:[%s1228_s3 + $0x18] sm:$0xff]   ;;  %v896_v16 = vld [vmem:[%s1228_s3 + $0x8] sm:$0xff]   ;;  %v220_v43 = vsub.s32 0, %v1167_v42 }
  0x21   :  { %787 = vmatprep.subr.bf16.mxu0 %v1009_v1  ;;  %813 = vmatprep.mubr.msk.bf16.mxu1 %vm1010_vm0, %v1009_v1  ;;  %v895_v15 = vld [vmem:[%s1228_s3 + $0x10] sm:$0xff]   ;;  %v897_v17 = vld [vmem:[%s1228_s3] sm:$0xff]   ;;  %v900_v27 = vld [vmem:[#allocation2 + $0x8] sm:$0xff]  }
  0x22   :  { %806 = vmatpush3.bf16.msra.mxu1 %v898_v12  ;;  %v901_v28 = vld [vmem:[#allocation2] sm:$0xff]   ;;  %v902_v34 = vld [vmem:[%s1230_s5 + $0x38] sm:$0xff]   ;;  %v903_v35 = vld [vmem:[%s1230_s5 + $0x30] sm:$0xff]  }
  0x23   :  { %80 = vperm.xlu1 %889, %v75_v4   ;;  %70 = vperm.xlu0 %888, %v65_v5   ;;  %v904_v36 = vld [vmem:[%s1230_s5 + $0x28] sm:$0xff]   ;;  %v905_v37 = vld [vmem:[%s1230_s5 + $0x20] sm:$0xff]   ;;  %v906_v38 = vld [vmem:[%s1230_s5 + $0x18] sm:$0xff]  }
  0x24   :  { %788 = vmatpush3.bf16.msra.mxu0 %v891_v7  ;;  %807 = vmatprep.subr.bf16.mxu1 %v1009_v1  ;;  %v907_v39 = vld [vmem:[%s1230_s5 + $0x10] sm:$0xff]   ;;  %v908_v40 = vld [vmem:[%s1230_s5 + $0x8] sm:$0xff]   ;;  %v909_v41 = vld [vmem:[%s1230_s5] sm:$0xff]  }
  0x25   :  { %789 = vmatprep.subr.bf16.mxu0 %v1009_v1  ;;  %v1173_v44 = vld [vmem:[%s1233_s8] sm:$0xf]  ;;  %v914_v12 = vld [vmem:[%s1231_s6 + $0x18] sm:$0xff]  }
  0x26   :  { %808 = vmatpush3.bf16.msra.mxu1 %v899_v13  ;;  %v221_v45 = vrot.slane %v1173_v44, %v220_v43  ;;  %v915_v13 = vld [vmem:[%s1231_s6 + $0x10] sm:$0xff]  }
  0x27   :  { %92 = vperm.xlu1 %889, %v87_v8   ;;  %89 = vperm.xlu0 %888, %v86_v9   ;;  %v910_v8 = vld [vmem:[%s1231_s6 + $0x38] sm:$0xff]   ;;  %v911_v9 = vld [vmem:[%s1231_s6 + $0x30] sm:$0xff]  }
  0x28   :  { %790 = vmatpush3.bf16.msra.mxu0 %v892_v10  ;;  %809 = vmatprep.subr.bf16.mxu1 %v1009_v1  ;;  %v912_v10 = vld [vmem:[%s1231_s6 + $0x28] sm:$0xff]  }
  0x29   :  { %791 = vmatprep.subr.bf16.mxu0 %v1009_v1 }
  0x2a   :  { %810 = vmatpush3.bf16.msra.mxu1 %v900_v27 }
  0x2b   :  { %811 = vmatprep.subr.bf16.mxu1 %v1009_v1 }
  0x2c   :  { %792 = vmatpush3.bf16.msra.mxu0 %v893_v11  ;;  %v913_v11 = vld [vmem:[%s1231_s6 + $0x20] sm:$0xff]  }
  0x2d   :  { %793 = vmatprep.subr.bf16.mxu0 %v1009_v1 }
  0x2e   :  { %812 = vmatpush3.bf16.msra.mxu1 %v901_v28 }
  0x2f   :  { %817 = vmatprep.subr.bf16.mxu1 %v1009_v1 }
  0x30   :  { %794 = vmatpush3.bf16.msra.mxu0 %v894_v14  ;;  %v916_v14 = vld [vmem:[%s1231_s6 + $0x8] sm:$0xff]  }
  0x31   :  { %795 = vmatprep.subr.bf16.mxu0 %v1009_v1 }
  0x34   :  { %796 = vmatpush3.bf16.msra.mxu0 %v895_v15  ;;  %v917_v15 = vld [vmem:[%s1231_s6] sm:$0xff]   ;;  %s1012_s6 = smov [#allocation7]  }
  0x35   :  { %797 = vmatprep.subr.bf16.mxu0 %v1009_v1  ;;  %s690_s25 = sshll.u32 %s1012_s6, 4  ;;  %s691_s25 = int_to_ptr.vmem [resolvable:$true] %s690_s25 }
  0x36   :  { %s978_s26 = scalar_lea.vmem %s691_s25, 256  ;;  %p983_p11 = scmp.lt.s32.totalorder %s691_s25, %s691_s25 }
  0x37   :  { %p979_p10 = scmp.ne.s32.totalorder %s691_s25, %s978_s26  ;;  %p984_p12 = scmp.lt.s32.totalorder %s978_s26, %s978_s26 }
  0x38   :  { %798 = vmatpush3.bf16.msra.mxu0 %v896_v16  ;;  %v328_v16 = vsub.s32 1, %v1167_v42 }
  0x39   :  { %799 = vmatprep.subr.bf16.mxu0 %v1009_v1  ;;  %p985_p13 = por %p984_p12, %p983_p11 }
  0x3b   :  { %p986_p0 = pnand %p985_p13, %p979_p10 }
  0x3c   :  { %800 = vmatpush3.bf16.msra.mxu0 %v897_v17  ;;  %v329_v17 = vrot.slane %v1173_v44, %v328_v16 }
  0x3d   :  { %837 = vmatprep.subr.bf16.mxu0 %v1009_v1 }
  0x9a   :  { %v78_v19 = vpop.permute.xlu1 %77  ;;  %v68_v20 = vpop.permute.xlu0 %67 }
  0x9b   :  { %vm82_vm1 = vcmp.eq.s32.totalorder %v63_v21, %v78_v19  ;;  %vm72_vm2 = vcmp.eq.s32.totalorder %v63_v21, %v68_v20 }
  0x9c   :  { %vm84_vm5 = vmor %vm72_vm2, %vm82_vm1 }
  0x9e   :  { %v81_v22 = vpop.permute.xlu1 %80  ;;  %v71_v23 = vpop.permute.xlu0 %70 }
  0x9f   :  { %vm83_vm3 = vcmp.eq.s32.totalorder %v63_v21, %v81_v22  ;;  %vm73_vm4 = vcmp.eq.s32.totalorder %v63_v21, %v71_v23 }
  0xa0   :  { %vm85_vm6 = vmor %vm73_vm4, %vm83_vm3 }
  0xa2   :  { %v93_v24 = vpop.permute.xlu1 %92  ;;  %v90_v25 = vpop.permute.xlu0 %89 }
  0xa3   :  { %vm95_vm7 = vcmp.eq.s32.totalorder %v63_v21, %v93_v24  ;;  %vm94_vm8 = vcmp.eq.s32.totalorder %v63_v21, %v90_v25 }
  0xa4   :  { %vm97_vm9 = vmor %vm85_vm6, %vm95_vm7 }
  0xa5   :  { %vm96_vm10 = vmor %vm84_vm5, %vm94_vm8 }
  0xa6   :  { %vm713_vm11 = vmpackc.low %vm97_vm9, %vm96_vm10 }
  0xa7   :  { %802 = vmatmul.mubr.msk.bf16.vlgmr.msra.gmra.mxu0 %vm713_vm11, %v1011_v26 }
  0xa8   :  { %853 = vmatprep.mubr.msk.bf16.mxu0 %vm1010_vm0, %v1009_v1  ;;  %838 = vmatpush3.bf16.msra.mxu0 %v910_v8 }
  0xa9   :  { %839 = vmatprep.subr.bf16.mxu0 %v1009_v1 }
  0xac   :  { %840 = vmatpush3.bf16.msra.mxu0 %v911_v9 }
  0xad   :  { %841 = vmatprep.subr.bf16.mxu0 %v1009_v1 }
  0xb0   :  { %842 = vmatpush3.bf16.msra.mxu0 %v912_v10 }
  0xb1   :  { %843 = vmatprep.subr.bf16.mxu0 %v1009_v1 }
  0xb4   :  { %844 = vmatpush3.bf16.msra.mxu0 %v913_v11 }
  0xb5   :  { %845 = vmatprep.subr.bf16.mxu0 %v1009_v1 }
  0xb8   :  { %846 = vmatpush3.bf16.msra.mxu0 %v914_v12 }
  0xb9   :  { %847 = vmatprep.subr.bf16.mxu0 %v1009_v1 }
  0xbc   :  { %848 = vmatpush3.bf16.msra.mxu0 %v915_v13 }
  0xbd   :  { %849 = vmatprep.subr.bf16.mxu0 %v1009_v1 }
  0xc0   :  { %850 = vmatpush3.bf16.msra.mxu0 %v916_v14 }
  0xc1   :  { %851 = vmatprep.subr.bf16.mxu0 %v1009_v1 }
  0xc4   :  { %852 = vmatpush3.bf16.msra.mxu0 %v917_v15 }
 0x167   :  { %v201_v29 = vpop.f32.mrf.mxu0 }
 0x169   :  { %v803_v30 = vpop.f32.mrf.mxu0 }
 0x16b   :  { %v204_v31 = vpop.f32.mrf.mxu0 }
 0x16c   :  { %v208_v32 = vpack.c.bf16 %v204_v31, %v201_v29 }
 0x16d   :  { %v804_v33 = vpop.f32.mrf.mxu0 }
 0x16e   :  { %814 = vmatmul.mubr.msk.bf16.vlgmr.msra.gmra.mxu1 %vm246_vm12, %v208_v32 }
 0x16f   :  { %833 = vmatprep.mubr.msk.bf16.mxu1 %vm1010_vm0, %v1009_v1  ;;  %818 = vmatpush3.bf16.msra.mxu1 %v902_v34 }
 0x170   :  { %819 = vmatprep.subr.bf16.mxu1 %v1009_v1 }
 0x173   :  { %820 = vmatpush3.bf16.msra.mxu1 %v903_v35 }
 0x174   :  { %821 = vmatprep.subr.bf16.mxu1 %v1009_v1 }
 0x177   :  { %822 = vmatpush3.bf16.msra.mxu1 %v904_v36 }
 0x178   :  { %823 = vmatprep.subr.bf16.mxu1 %v1009_v1 }
 0x17b   :  { %824 = vmatpush3.bf16.msra.mxu1 %v905_v37 }
 0x17c   :  { %825 = vmatprep.subr.bf16.mxu1 %v1009_v1 }
 0x17f   :  { %826 = vmatpush3.bf16.msra.mxu1 %v906_v38 }
 0x180   :  { %827 = vmatprep.subr.bf16.mxu1 %v1009_v1 }
 0x183   :  { %828 = vmatpush3.bf16.msra.mxu1 %v907_v39 }
 0x184   :  { %829 = vmatprep.subr.bf16.mxu1 %v1009_v1 }
 0x187   :  { %830 = vmatpush3.bf16.msra.mxu1 %v908_v40 }
 0x188   :  { %831 = vmatprep.subr.bf16.mxu1 %v1009_v1 }
 0x18b   :  { %832 = vmatpush3.bf16.msra.mxu1 %v909_v41 }
 0x18c   :  { %857 = vmatprep.subr.bf16.mxu1 %v1009_v1 }
 0x22e   :  { %v284_v46 = vpop.f32.mrf.mxu1 }
 0x22f   :  { %v285_v47 = vadd.f32 %v284_v46, %v221_v45 }
 0x230   :  { %v815_v48 = vpop.f32.mrf.mxu1 }
 0x231   :  { %v291_v49 = vmul.f32 %v285_v47, %v285_v47 }
 0x232   :  { %v287_v50 = vpop.f32.mrf.mxu1 }
 0x233   :  { %v293_v51 = vmul.f32 %v291_v49, %v285_v47  ;;  %v288_v52 = vadd.f32 %v287_v50, %v221_v45  ;;  %v456_v45 = vsub.s32 2, %v1167_v42 }
 0x234   :  { %v816_v53 = vpop.f32.mrf.mxu1 }
 0x235   :  { %v295_v54 = vmul.f32 0.044715, %v293_v51  ;;  %v292_v55 = vmul.f32 %v288_v52, %v288_v52  ;;  %v457_v46 = vrot.slane %v1173_v44, %v456_v45 }
 0x237   :  { %v297_v56 = vadd.f32 %v295_v54, %v285_v47  ;;  %v294_v57 = vmul.f32 %v292_v55, %v288_v52  ;;  %v918_v55 = vld [vmem:[#allocation5 + $0x38] sm:$0xff]  }
 0x239   :  { %v299_v58 = vmul.f32 0.7978846, %v297_v56  ;;  %v296_v59 = vmul.f32 0.044715, %v294_v57  ;;  %v919_v56 = vld [vmem:[#allocation5 + $0x30] sm:$0xff]   ;;  %v920_v57 = vld [vmem:[#allocation5 + $0x28] sm:$0xff]  }
 0x23b   :  { %926 = vtanh.f32 %v299_v58  ;;  %v298_v60 = vadd.f32 %v296_v59, %v288_v52  ;;  %v921_v58 = vld [vmem:[#allocation5 + $0x20] sm:$0xff]   ;;  %v922_v59 = vld [vmem:[#allocation5 + $0x18] sm:$0xff]  }
 0x23d   :  { %v300_v61 = vmul.f32 0.7978846, %v298_v60  ;;  %v923_v60 = vld [vmem:[#allocation5 + $0x10] sm:$0xff]  }
 0x23f   :  { %928 = vtanh.f32 %v300_v61  ;;  %v924_v61 = vld [vmem:[#allocation5 + $0x8] sm:$0xff]  }
 0x248   :  { %v927_v62 = vpop.eup %926 }
 0x249   :  { %v303_v63 = vadd.f32 1.0, %v927_v62  ;;  %v925_v62 = vld [vmem:[#allocation5] sm:$0xff]  }
 0x24b   :  { %v305_v2 = vmul.f32 0.5, %v303_v63 }
 0x24c   :  { %v929_v0 = vpop.eup %928 }
 0x24d   :  { %v304_v3 = vadd.f32 1.0, %v929_v0  ;;  %v307_v5 = vmul.f32 %v305_v2, %v285_v47 }
 0x24f   :  { %v306_v4 = vmul.f32 0.5, %v304_v3 }
 0x251   :  { %v308_v6 = vmul.f32 %v306_v4, %v288_v52 }
 0x253   :  { %v309_v7 = vpack.c.bf16 %v308_v6, %v307_v5 }
 0x255   :  { %834 = vmatmul.mubr.bf16.vlgmr.msra.gmra.mxu1 %v309_v7 }
 0x256   :  { %873 = vmatprep.mubr.msk.bf16.mxu1 %vm1010_vm0, %v1009_v1  ;;  %858 = vmatpush3.bf16.msra.mxu1 %v918_v55 }
 0x257   :  { %859 = vmatprep.subr.bf16.mxu1 %v1009_v1 }
 0x25a   :  { %860 = vmatpush3.bf16.msra.mxu1 %v919_v56 }
 0x25b   :  { %861 = vmatprep.subr.bf16.mxu1 %v1009_v1 }
 0x25e   :  { %862 = vmatpush3.bf16.msra.mxu1 %v920_v57 }
 0x25f   :  { %863 = vmatprep.subr.bf16.mxu1 %v1009_v1 }
 0x262   :  { %864 = vmatpush3.bf16.msra.mxu1 %v921_v58 }
 0x263   :  { %865 = vmatprep.subr.bf16.mxu1 %v1009_v1 }
 0x266   :  { %866 = vmatpush3.bf16.msra.mxu1 %v922_v59 }
 0x267   :  { %867 = vmatprep.subr.bf16.mxu1 %v1009_v1 }
 0x26a   :  { %868 = vmatpush3.bf16.msra.mxu1 %v923_v60 }
 0x26b   :  { %869 = vmatprep.subr.bf16.mxu1 %v1009_v1 }
 0x26e   :  { %870 = vmatpush3.bf16.msra.mxu1 %v924_v61 }
 0x26f   :  { %871 = vmatprep.subr.bf16.mxu1 %v1009_v1 }
 0x272   :  { %872 = vmatpush3.bf16.msra.mxu1 %v925_v62 }
 0x315   :  { %v412_v18 = vpop.f32.mrf.mxu1 }
 0x316   :  { %v413_v19 = vadd.f32 %v412_v18, %v329_v17 }
 0x317   :  { %v835_v20 = vpop.f32.mrf.mxu1 }
 0x318   :  { %v419_v21 = vmul.f32 %v413_v19, %v413_v19  ;;  %v592_v20 = vsub.s32 3, %v1167_v42 }
 0x319   :  { %v415_v22 = vpop.f32.mrf.mxu1 }
 0x31a   :  { %v421_v23 = vmul.f32 %v419_v21, %v413_v19  ;;  %v416_v24 = vadd.f32 %v415_v22, %v329_v17  ;;  %v593_v21 = vrot.slane %v1173_v44, %v592_v20 }
 0x31b   :  { %v836_v25 = vpop.f32.mrf.mxu1 }
 0x31c   :  { %v423_v26 = vmul.f32 0.044715, %v421_v23  ;;  %v420_v27 = vmul.f32 %v416_v24, %v416_v24 }
 0x31e   :  { %v425_v28 = vadd.f32 %v423_v26, %v413_v19  ;;  %v422_v29 = vmul.f32 %v420_v27, %v416_v24 }
 0x320   :  { %v427_v30 = vmul.f32 0.7978846, %v425_v28  ;;  %v424_v31 = vmul.f32 0.044715, %v422_v29 }
 0x322   :  { %930 = vtanh.f32 %v427_v30  ;;  %v426_v32 = vadd.f32 %v424_v31, %v416_v24 }
 0x324   :  { %v428_v33 = vmul.f32 0.7978846, %v426_v32 }
 0x326   :  { %932 = vtanh.f32 %v428_v33 }
 0x32f   :  { %v931_v34 = vpop.eup %930 }
 0x330   :  { %v431_v35 = vadd.f32 1.0, %v931_v34 }
 0x332   :  { %v433_v37 = vmul.f32 0.5, %v431_v35 }
 0x333   :  { %v933_v36 = vpop.eup %932 }
 0x334   :  { %v432_v38 = vadd.f32 1.0, %v933_v36  ;;  %v435_v40 = vmul.f32 %v433_v37, %v413_v19 }
 0x336   :  { %v434_v39 = vmul.f32 0.5, %v432_v38 }
 0x338   :  { %v436_v41 = vmul.f32 %v434_v39, %v416_v24 }
 0x33a   :  { %v437_v43 = vpack.c.bf16 %v436_v41, %v435_v40 }
 0x33c   :  { %854 = vmatmul.mubr.bf16.vlgmr.msra.gmra.mxu0 %v437_v43 }
 0x3fc   :  { %v540_v47 = vpop.f32.mrf.mxu0 }
 0x3fd   :  { %v541_v48 = vadd.f32 %v540_v47, %v457_v46 }
 0x3fe   :  { %v855_v49 = vpop.f32.mrf.mxu0 }
 0x3ff   :  { %547 = vadd.xlane.f32.xlu0 %v541_v48  ;;  %v553_v52 = vmul.f32 %v541_v48, %v541_v48 }
 0x400   :  { %v543_v50 = vpop.f32.mrf.mxu0 }
 0x401   :  { %v544_v51 = vadd.f32 %v543_v50, %v457_v46 }
 0x402   :  { %v856_v53 = vpop.f32.mrf.mxu0 }
 0x403   :  { %555 = vadd.xlane.f32.xlu0 %v553_v52  ;;  %549 = vadd.xlane.f32.xlu1 %v544_v51  ;;  %v554_v54 = vmul.f32 %v544_v51, %v544_v51 }
 0x407   :  { %557 = vadd.xlane.f32.xlu0 %v554_v54 }
 0x488   :  { %v548_v63 = vpop.xlane.xlu0 %547 }
 0x489   :  { %v551_v0 = vmul.f32 0.03125, %v548_v63 }
 0x48b   :  { %v561_v4 = vmul.f32 %v551_v0, %v551_v0  ;;  %v565_v15 = vsub.f32 %v541_v48, %v551_v0 }
 0x48c   :  { %v556_v2 = vpop.xlane.xlu0 %555  ;;  %v550_v3 = vpop.xlane.xlu1 %549 }
 0x48d   :  { %v559_v5 = vmul.f32 0.03125, %v556_v2  ;;  %v552_v6 = vmul.f32 0.03125, %v550_v3 }
 0x48f   :  { %v563_v7 = vsub.f32 %v559_v5, %v561_v4  ;;  %v562_v10 = vmul.f32 %v552_v6, %v552_v6  ;;  %v566_v1 = vsub.f32 %v544_v51, %v552_v6 }
 0x490   :  { %v558_v8 = vpop.xlane.xlu0 %557 }
 0x491   :  { %v567_v9 = vadd.f32 1e-05, %v563_v7  ;;  %v560_v11 = vmul.f32 0.03125, %v558_v8 }
 0x493   :  { %v564_v12 = vsub.f32 %v560_v11, %v562_v10  ;;  %934 = vrsqrt.f32 %v567_v9 }
 0x495   :  { %v568_v13 = vadd.f32 1e-05, %v564_v12 }
 0x497   :  { %936 = vrsqrt.f32 %v568_v13 }
 0x4a0   :  { %v935_v14 = vpop.eup %934 }
 0x4a1   :  { %v571_v17 = vmul.f32 %v935_v14, %v565_v15 }
 0x4a4   :  { %v937_v16 = vpop.eup %936 }
 0x4a5   :  { %v572_v18 = vmul.f32 %v937_v16, %v566_v1 }
 0x4a7   :  { %v573_v19 = vpack.c.bf16 %v572_v18, %v571_v17 }
 0x4a9   :  { %874 = vmatmul.mubr.bf16.vlgmr.msra.gmra.mxu1 %v573_v19 }
 0x569   :  { %v676_v22 = vpop.f32.mrf.mxu1 }
 0x56a   :  { %v677_v23 = vadd.f32 %v676_v22, %v593_v21 }
 0x56b   :  { %v875_v24 = vpop.f32.mrf.mxu1 }
 0x56c   :  { %683 = vst [vmem:[#allocation7] sm:$0xff] %v677_v23 }
 0x56d   :  { %v679_v25 = vpop.f32.mrf.mxu1 }
 0x56e   :  { %v680_v26 = vadd.f32 %v679_v25, %v593_v21 }
 0x56f   :  { %v876_v27 = vpop.f32.mrf.mxu1 }
 0x570   :  { %684 = vst [vmem:[#allocation7 + $0x8] sm:$0xff] %v680_v26 }
 0x571   :  { %989 = shalt.err (!%p986_p0)
}
 0x572   :  { %s1013_s27 = smov 128   ;;  %s1014_s28 = smov 8  }
 0x573   :  { %696 = dma.vmem_to_hbm [thread:$0]  %s691_s25, 256, %s1234_s9, [#allocation4], %s1013_s27, %s1013_s27, %s1014_s28  }
 0x574   :  { %1002 = dma.done.wait [#allocation4], 256  }
 0x575   :  { %1003 = vsyncadd [#allocation4], 4294967040 }
 0x576   :  { %700 = vsyncpa [#allocation3], 1 }
 0x577   :  { %701 = vsyncpa [#allocation6], 1 }
 0x578   :  { %702 = vsyncpa [#allocation4], 1 }

</bundles_post_ra>
